<compile_context>
chip_gen: v5e
topology: v5e:2x2
jax: 0.10.0
libtpu: 0.0.40
codegen_flags: <defaults>
</compile_context>

<pallas_src>
import jax
import jax.numpy as jnp
from jax.experimental import pallas as pl
from jax.experimental.pallas import tpu as pltpu

LN_EPS = 1e-5  # nn.LayerNorm default


def add_and_norm_kernel(x_ref, sub_ref, gamma_ref, beta_ref, o_ref):
    # x_ref/sub_ref/o_ref: (row_tile, d_model) in VMEM; gamma/beta: (1, d_model).
    inv_d = 1.0 / x_ref.shape[-1]

    y = x_ref[...].astype(jnp.float32) + sub_ref[...].astype(jnp.float32)

    # One-pass biased variance: var = E[y^2] - mean^2 (f32 accumulation).
    # Both reductions read the same block -> no serial XLU dependency and one
    # fewer full-block f32 temporary than the centered two-pass form.
    s1 = jnp.sum(y, axis=-1, keepdims=True)
    s2 = jnp.sum(y * y, axis=-1, keepdims=True)
    mean = s1 * inv_d
    var = jnp.maximum(s2 * inv_d - mean * mean, 0.0)  # clamp tiny negative cancellation
    inv = jax.lax.rsqrt(var + LN_EPS)

    gamma = gamma_ref[...].astype(jnp.float32)  # broadcasts over rows
    beta = beta_ref[...].astype(jnp.float32)
    o_ref[...] = ((y - mean) * inv * gamma + beta).astype(o_ref.dtype)


def _round_down_8(v):
    return max(8, (int(v) // 8) * 8)


def _round_up_8(v):
    return ((int(v) + 7) // 8) * 8


def _vmem_capacity_bytes():
    """Physical VMEM on this chip; conservative (v7x-sized) fallback."""
    try:
        return int(pltpu.get_tpu_info().vmem_capacity_bytes)
    except Exception:
        return 64 << 20


def _pick_row_tile(rows, d_model, itemsize, vmem_capacity, max_tile=1024):
    """Largest row tile whose streams + f32 intermediates fit comfortably in VMEM,
    while keeping >= 8 grid steps so the pipeline (and both v7x TCs) stay busy."""
    # Per row: 3 I/O streams double-buffered in caller dtype + ~3 full-block f32
    # intermediates materialized by the upcast math inside the body.
    bytes_per_row = 6 * d_model * itemsize + 3 * d_model * 4
    tile_budget = int(vmem_capacity * 0.40)          # leave headroom for scratch/regalloc
    t = tile_budget // max(bytes_per_row, 1)
    t = min(t, max_tile)                             # >=85% HBM roofline already at 512-1024
    t = min(t, _round_up_8(pl.cdiv(rows, 8)))        # keep >= 8 grid steps
    t = min(t, _round_up_8(rows))
    return _round_down_8(t)


def add_and_norm(x, sub_layer_output, gamma, beta, *, row_tile=None):
    """x, sub_layer_output: (batch, seq, d_model); gamma, beta: (d_model,)."""
    batch, seq, d_model = x.shape
    rows = batch * seq
    itemsize = jnp.dtype(x.dtype).itemsize
    vmem_capacity = _vmem_capacity_bytes()

    if row_tile is None:
        row_tile = _pick_row_tile(rows, d_model, itemsize, vmem_capacity)

    grid = (pl.cdiv(rows, row_tile),)  # partial last tile is masked by Pallas

    x2 = x.reshape(rows, d_model)
    s2 = sub_layer_output.reshape(rows, d_model)
    g2 = gamma.reshape(1, d_model)
    b2 = beta.reshape(1, d_model)

    # VMEM: 3 streams double-buffered + f32 intermediates + params + margin,
    # capped at ~60% of physical VMEM (38 MiB on v7x, 76 MiB on v5e/v6e).
    vmem_bytes = (6 * row_tile * d_model * itemsize
                  + 3 * row_tile * d_model * 4
                  + 4 * d_model * 4
                  + (2 << 20))
    vmem_bytes = int(min(max(vmem_bytes, 4 << 20), int(0.6 * vmem_capacity)))

    out = pl.pallas_call(
        add_and_norm_kernel,
        out_shape=jax.ShapeDtypeStruct((rows, d_model), x.dtype),
        grid_spec=pltpu.PrefetchScalarGridSpec(
            num_scalar_prefetch=0,
            grid=grid,
            in_specs=[
                pl.BlockSpec((row_tile, d_model), lambda i: (i, 0)),
                pl.BlockSpec((row_tile, d_model), lambda i: (i, 0)),
                pl.BlockSpec((1, d_model), lambda i: (0, 0)),
                pl.BlockSpec((1, d_model), lambda i: (0, 0)),
            ],
            out_specs=pl.BlockSpec((row_tile, d_model), lambda i: (i, 0)),
        ),
        compiler_params=pltpu.CompilerParams(
            dimension_semantics=("parallel",),
            vmem_limit_bytes=vmem_bytes,
        ),
    )(x2, s2, g2, b2)

    return out.reshape(batch, seq, d_model)


def reference_add_and_norm(x, sub, gamma, beta):
    y = x.astype(jnp.float32) + sub.astype(jnp.float32)
    mean = jnp.mean(y, axis=-1, keepdims=True)
    var = jnp.mean((y - mean) ** 2, axis=-1, keepdims=True)
    out = (y - mean) * jax.lax.rsqrt(var + LN_EPS) * gamma.astype(jnp.float32) \
        + beta.astype(jnp.float32)
    return out.astype(x.dtype)


def _run_case(key, batch, seq, d_model, dtype, atol, rtol):
    kx, ks, kg, kb = jax.random.split(key, 4)
    x = jax.random.normal(kx, (batch, seq, d_model), dtype=jnp.float32).astype(dtype)
    sub = jax.random.normal(ks, (batch, seq, d_model), dtype=jnp.float32).astype(dtype)
    gamma = (1.0 + 0.1 * jax.random.normal(kg, (d_model,), dtype=jnp.float32))
    beta = 0.1 * jax.random.normal(kb, (d_model,), dtype=jnp.float32)

    out = jax.block_until_ready(add_and_norm(x, sub, gamma, beta))
    ref = reference_add_and_norm(x, sub, gamma, beta)

    assert out.shape == (batch, seq, d_model)
    assert out.dtype == dtype
    assert jnp.allclose(out.astype(jnp.float32), ref.astype(jnp.float32),
                        atol=atol, rtol=rtol), f"mismatch ({dtype}, {batch}x{seq}x{d_model})"


if __name__ == "__main__":
    key = jax.random.PRNGKey(0)
    k0, k1, k2 = jax.random.split(key, 3)

    # Lane-dense d_model (multiple of 128), small shapes.
    _run_case(k0, batch=2, seq=8, d_model=128, dtype=jnp.float32, atol=1e-5, rtol=1e-5)

    # bf16 I/O path (f32 math inside kernel, bf16 in/out -> half the HBM traffic).
    _run_case(k1, batch=2, seq=8, d_model=128, dtype=jnp.bfloat16, atol=2e-2, rtol=2e-2)

    # Non-divisible rows (batch*seq = 15) -> cdiv grid + masked partial last tile.
    _run_case(k2, batch=3, seq=5, d_model=128, dtype=jnp.float32, atol=1e-5, rtol=1e-5)

    print("KERNEL_OK")
</pallas_src>

<mosaic_0001>
module attributes {stable_mosaic.version = 11 : i64} {
  func.func @add_and_norm_kernel(%arg0: i32, %arg1: memref<8x128xf32, #tpu.memory_space<vmem>>, %arg2: memref<8x128xf32, #tpu.memory_space<vmem>>, %arg3: memref<1x128xf32, #tpu.memory_space<vmem>>, %arg4: memref<1x128xf32, #tpu.memory_space<vmem>>, %arg5: memref<8x128xf32, #tpu.memory_space<vmem>>) attributes {dimension_semantics = [#tpu.dimension_semantics<parallel>], iteration_bounds = array<i64: 2>, scalar_prefetch = 0 : i64, scratch_operands = 0 : i64, tpu.core_type = #tpu.core_type<tc>, window_params = [{transform_indices = @transform_0, window_bounds = array<i64: 8, 128>}, {transform_indices = @transform_1, window_bounds = array<i64: 8, 128>}, {pipeline_mode = #tpu.pipeline_mode<synchronous>, transform_indices = @transform_2, window_bounds = array<i64: 1, 128>}, {pipeline_mode = #tpu.pipeline_mode<synchronous>, transform_indices = @transform_3, window_bounds = array<i64: 1, 128>}, {transform_indices = @transform_4, window_bounds = array<i64: 8, 128>}]} {
    %c0 = arith.constant 0 : index
    %c0_0 = arith.constant 0 : index
    %0 = vector.load %arg1[%c0, %c0_0] : memref<8x128xf32, #tpu.memory_space<vmem>>, vector<8x128xf32>
    %c0_1 = arith.constant 0 : index
    %c0_2 = arith.constant 0 : index
    %1 = vector.load %arg2[%c0_1, %c0_2] : memref<8x128xf32, #tpu.memory_space<vmem>>, vector<8x128xf32>
    %2 = arith.addf %0, %1 : vector<8x128xf32>
    %cst = arith.constant dense<0.000000e+00> : vector<8xf32>
    %3 = vector.multi_reduction <add>, %2, %cst [1] : vector<8x128xf32> to vector<8xf32>
    %4 = vector.shape_cast %3 : vector<8xf32> to vector<8x1xf32>
    %5 = arith.mulf %2, %2 : vector<8x128xf32>
    %cst_3 = arith.constant dense<0.000000e+00> : vector<8xf32>
    %6 = vector.multi_reduction <add>, %5, %cst_3 [1] : vector<8x128xf32> to vector<8xf32>
    %7 = vector.shape_cast %6 : vector<8xf32> to vector<8x1xf32>
    %cst_4 = arith.constant 7.812500e-03 : f32
    %8 = vector.broadcast %cst_4 : f32 to vector<8x1xf32>
    %9 = arith.mulf %4, %8 : vector<8x1xf32>
    %cst_5 = arith.constant 7.812500e-03 : f32
    %10 = vector.broadcast %cst_5 : f32 to vector<8x1xf32>
    %11 = arith.mulf %7, %10 : vector<8x1xf32>
    %12 = arith.mulf %9, %9 : vector<8x1xf32>
    %13 = arith.subf %11, %12 : vector<8x1xf32>
    %cst_6 = arith.constant 0.000000e+00 : f32
    %14 = vector.broadcast %cst_6 : f32 to vector<8x1xf32>
    %15 = arith.maximumf %13, %14 : vector<8x1xf32>
    %cst_7 = arith.constant 9.99999974E-6 : f32
    %16 = vector.broadcast %cst_7 : f32 to vector<8x1xf32>
    %17 = arith.addf %15, %16 : vector<8x1xf32>
    %18 = math.rsqrt %17 : vector<8x1xf32>
    %c0_8 = arith.constant 0 : index
    %c0_9 = arith.constant 0 : index
    %19 = vector.load %arg3[%c0_8, %c0_9] : memref<1x128xf32, #tpu.memory_space<vmem>>, vector<1x128xf32>
    %c0_10 = arith.constant 0 : index
    %c0_11 = arith.constant 0 : index
    %20 = vector.load %arg4[%c0_10, %c0_11] : memref<1x128xf32, #tpu.memory_space<vmem>>, vector<1x128xf32>
    %21 = vector.broadcast %9 : vector<8x1xf32> to vector<8x128xf32>
    %22 = arith.subf %2, %21 : vector<8x128xf32>
    %23 = vector.broadcast %18 : vector<8x1xf32> to vector<8x128xf32>
    %24 = arith.mulf %22, %23 : vector<8x128xf32>
    %25 = vector.broadcast %19 : vector<1x128xf32> to vector<8x128xf32>
    %26 = arith.mulf %24, %25 : vector<8x128xf32>
    %27 = vector.broadcast %20 : vector<1x128xf32> to vector<8x128xf32>
    %28 = arith.addf %26, %27 : vector<8x128xf32>
    %c0_12 = arith.constant 0 : index
    %c0_13 = arith.constant 0 : index
    %29 = vector.load %arg5[%c0_12, %c0_13] : memref<8x128xf32, #tpu.memory_space<vmem>>, vector<8x128xf32>
    tpu.vector_store %arg5[%c0_12, %c0_13], %28 {strides = array<i32>} : memref<8x128xf32, #tpu.memory_space<vmem>>, vector<8x128xf32>,
    return
  }
  func.func @transform_0(%arg0: i32) -> (i32, i32) {
    %c0_i32 = arith.constant 0 : i32
    %c0_i32_0 = arith.constant 0 : i32
    return %arg0, %c0_i32 : i32, i32
  }
  func.func @transform_1(%arg0: i32) -> (i32, i32) {
    %c0_i32 = arith.constant 0 : i32
    %c0_i32_0 = arith.constant 0 : i32
    return %arg0, %c0_i32 : i32, i32
  }
  func.func @transform_2(%arg0: i32) -> (i32, i32) {
    %c0_i32 = arith.constant 0 : i32
    %c0_i32_0 = arith.constant 0 : i32
    %c0_i32_1 = arith.constant 0 : i32
    return %c0_i32, %c0_i32_0 : i32, i32
  }
  func.func @transform_3(%arg0: i32) -> (i32, i32) {
    %c0_i32 = arith.constant 0 : i32
    %c0_i32_0 = arith.constant 0 : i32
    %c0_i32_1 = arith.constant 0 : i32
    return %c0_i32, %c0_i32_0 : i32, i32
  }
  func.func @transform_4(%arg0: i32) -> (i32, i32) {
    %c0_i32 = arith.constant 0 : i32
    %c0_i32_0 = arith.constant 0 : i32
    return %arg0, %c0_i32 : i32, i32
  }
}

</mosaic_0001>

<bundles_post_ra>
// kernel: tpu_custom_call.1
= control target key start
LH: loop header
LB: loop body
LE: loop exit
PB: predicated region body
PF: predicated region fallthrough
CT: control target
= control target key end

     0   :  { %s798_s0 = inlined_call_operand.hbm [shape: f32[16,128], index: 0, kind: input, shape index: {}]   ;;  %s799_s1 = inlined_call_operand.hbm [shape: f32[16,128], index: 1, kind: input, shape index: {}]   ;;  %s800_s2 = inlined_call_operand.vmem [shape: f32[1,128], index: 2, kind: input, shape index: {}]   ;;  %s801_s3 = inlined_call_operand.vmem [shape: f32[1,128], index: 3, kind: input, shape index: {}]   ;;  %s802_s4 = inlined_call_operand.hbm [shape: f32[16,128], index: 4, kind: output, shape index: {}]  }
   0x1   :  { %803 = sst [smem:[#allocation11_spill]] %s798_s0 }
   0x2   :  { %9 = vsyncpa [#allocation3], 0 }
   0x3   :  { %11 = vsyncpa [#allocation3 + $0x1], 0 }
   0x4   :  { %12 = vsyncpa [#allocation6], 0 }
   0x5   :  { %14 = vsyncpa [#allocation6 + $0x1], 0 }
   0x6   :  { %15 = vsyncpa [#allocation4], 0 }
   0x7   :  { %17 = vsyncpa [#allocation4 + $0x1], 0  ;;  %s627_s15 = smov 0   ;;  %s629_s16 = smov 0  }
   0x8   :  { %s631_s17 = smov 0   ;;  %s633_s18 = smov 0  }
   0x9 LB: > { %s648_s19 = sadd.s32 4294967295, %s600_s18   ;;  %s400_s20 = sadd.s32 4294967294, %s600_s18   ;;  %s600_s18 = sphi %s633_s18, %s815_s18   ;;  %s596_s17 = sphi %s631_s17, %s814_s17   ;;  %s592_s16 = sphi %s629_s16, %s813_s16   ;;  %s588_s15 = sphi %s627_s15, %s812_s15  }
   0xa   : > { %s652_s21 = sadd.s32 1, %s600_s18   ;;  %s30_s22 = sadd.s32 1, %s596_s17 }
   0xb   : > { %s27_s23 = ssub.s32 %s600_s18, %s652_s21  ;;  %p37_p0 = scmp.ne.s32.totalorder %s596_s17, %s592_s16 }
   0xc   : > { %p28_p1 = scmp.eq.s32.totalorder %s27_s23, 0  ;;  %p38_p2 = scmp.eq.s32.totalorder %s600_s18, 0 }
   0xd   : > { %p43_p3 = scmp.ne.s32.totalorder %s592_s16, %s588_s15  ;;  %p44_p4 = scmp.eq.s32.totalorder %s648_s19, 0 }
   0xe   : > { %s664_s24 = scalar_select %p28_p1, %s596_s17, %s30_s22  }
   0xf   : > { %p666_p5 = por %p38_p2, %p37_p0  ;;  %p670_p6 = por %p44_p4, %p43_p3 }
  0x10   : > { %p135_p7 = scmp.eq.s32.totalorder %s648_s19, 1  ;;  %p141_p8 = scmp.eq.s32.totalorder %s400_s20, 1 }
  0x11   : > { %p432_p10 = scmp.lt.s32.totalorder %s600_s18, 2  ;;  %s686_s29 = sand.u32 1, %s596_s17  }
  0x12   : > { %p677_p11 = por %p135_p7, %p37_p0  ;;  %p681_p12 = por %p141_p8, %p43_p3 }
  0x13   : > { %s404_s30 = sshll.u32 %s600_s18, 3  ;;  %s403_s5 = sshll.u32 %s686_s29, 3 }
  0x14   : > { %s808_s0 = sld [smem:[#allocation11_spill]]  ;;  %s171_s10 = scalar_lea.vmem [#allocation2], %s403_s5 }
  0x15   : > { %s179_s11 = sshll.u32 %s171_s10, 4  ;;  %p695_p13 = pnand %p432_p10, %p666_p5  ;;  %s180_s11 = int_to_ptr.vmem [resolvable:$true] %s179_s11 }
  0x16   : > { %p407_p0 = scmp.ge.s32.totalorder %s600_s18, 1  ;;  %p203_p1 = scmp.lt.s32.totalorder %s600_s18, 3 }
  0x17   : > { %s168_s13 = scalar_lea.sflag [#allocation3], %s686_s29  ;;  %p474_p3 = pneg %p695_p13 }
  0x1a   : > { %s175_s8 = scalar_lea.hbm %s808_s0, %s404_s30  ;;  %s477_s25 = scalar_lea.hbm %s808_s0, 16 }
  0x1b   : > { %s177_s9 = sshll.u32 %s175_s8, 4  ;;  %s178_s9 = int_to_ptr.hbm [resolvable:$true] %s177_s9 }
  0x1c   : > { %s470_s14 = sshra.s32 %s178_s9, 4  ;;  %s471_s14 = int_to_ptr.hbm [resolvable:$true] %s470_s14 }
  0x1d   : > { %s472_s20 = scalar_lea.hbm %s471_s14, 8  ;;  %p478_p5 = scmp.lt.s32.totalorder %s471_s14, %s808_s0 }
  0x1e   : > { %p473_p2 = scmp.ne.s32.totalorder %s471_s14, %s472_s20  ;;  %p479_p8 = scmp.lt.s32.totalorder %s477_s25, %s472_s20 }
  0x20   : > { %p475_p4 = pnand %p474_p3, %p473_p2  ;;  %p480_p10 = por %p479_p8, %p478_p5 }
  0x22   : > { %p476_p7 = pneg %p475_p4 }
  0x24   : > { %p481_p9 = pnand %p480_p10, %p476_p7 }
  0x26   : > { %484 = shalt.err (!%p481_p9)
}
  0x27   : > { %424 = dma.hbm_to_vmem [thread:$0]  (!%p695_p13), %s178_s9, 128, %s180_s11, %s168_s13  }
  0x28   : > { %p719_p2 = pnand %p407_p0, %p203_p1  ;;  %s194_s14 = scalar_lea.hbm %s799_s1, %s404_s30 }
  0x29   : > { %s196_s20 = sshll.u32 %s194_s14, 4  ;;  %s190_s23 = scalar_lea.vmem [#allocation5], %s403_s5  ;;  %s197_s20 = int_to_ptr.hbm [resolvable:$true] %s196_s20 }
  0x2a   : > { %s198_s25 = sshll.u32 %s190_s23, 4  ;;  %s187_s6 = scalar_lea.sflag [#allocation6], %s686_s29  ;;  %s199_s25 = int_to_ptr.vmem [resolvable:$true] %s198_s25 }
  0x2b   : > { %s500_s7 = sshra.s32 %s197_s20, 4  ;;  %s507_s13 = scalar_lea.hbm %s799_s1, 16  ;;  %s501_s7 = int_to_ptr.hbm [resolvable:$true] %s500_s7 }
  0x2c   : > { %s502_s0 = scalar_lea.hbm %s501_s7, 8  ;;  %p508_p4 = scmp.lt.s32.totalorder %s501_s7, %s799_s1 }
  0x2d   : > { %p503_p9 = scmp.ne.s32.totalorder %s501_s7, %s502_s0  ;;  %p509_p7 = scmp.lt.s32.totalorder %s507_s13, %s502_s0 }
  0x2f   : > { %p505_p0 = pnand %p503_p9, %p474_p3  ;;  %p510_p5 = por %p509_p7, %p508_p4 }
  0x31   : > { %p506_p1 = pneg %p505_p0 }
  0x33   : > { %p511_p8 = pnand %p510_p5, %p506_p1 }
  0x35   : > { %514 = shalt.err (!%p511_p8)
}
  0x36   : > { %427 = dma.hbm_to_vmem [thread:$0]  (!%p695_p13), %s197_s20, 128, %s199_s25, %s187_s6  }
  0x37   : > { %207 = sbr.rel (%p719_p2) target bundleno = 225 (0xe1), region = 36  ;;  %s741_s29 = sand.u32 (!%p719_p2), 1, %s592_s16  }
  0x38   : > { %s744_s5 = sshll.u32 (!%p719_p2), %s741_s29, 3  ;;  %s210_s22 = scalar_lea.sflag (!%p719_p2), [#allocation3], %s741_s29 }
  0x39   : > { %s213_s0 = scalar_lea.vmem (!%p719_p2), [#allocation2], %s744_s5 }
  0x3c   : > { %575 = dma.done.wait (%p670_p6), %s210_s22, 128  }
  0x3d   : > { %577 = vsyncadd (%p670_p6), %s210_s22, 4294967168  ;;  %s220_s12 = scalar_lea.sflag [#allocation6], %s741_s29  ;;  %s223_s8 = scalar_lea.vmem [#allocation5], %s744_s5 }
  0x3e   : > { %579 = dma.done.wait (%p670_p6), %s220_s12, 128  }
  0x3f   : > { %581 = vsyncadd (%p670_p6), %s220_s12, 4294967168  ;;  %v254_v0 = vld [vmem:[%s213_s0] sm:$0xff]  ;;  %v255_v1 = vld [vmem:[%s223_s8] sm:$0xff]  ;;  %s412_s26 = sshll.u32 %s648_s19, 3  ;;  %s253_s19 = scalar_lea.vmem [#allocation7], %s744_s5 }
  0x40   : > { %v256_v2 = vadd.f32 %v255_v1, %v254_v0  ;;  %v466_v19 = vld [vmem:[%s800_s2] ss:$0 sm:$0xff]  ;;  %s302_s6 = scalar_lea.hbm %s802_s4, %s412_s26  ;;  %s304_s11 = sshll.u32 %s253_s19, 4  ;;  %s305_s11 = int_to_ptr.vmem [resolvable:$true] %s304_s11 }
  0x41   : > { %v467_v22 = vld [vmem:[%s801_s3] ss:$0 sm:$0xff]  ;;  %s306_s13 = sshll.u32 %s302_s6, 4  ;;  %s292_s10 = scalar_lea.sflag [#allocation4], %s741_s29  ;;  %s307_s13 = int_to_ptr.hbm [resolvable:$true] %s306_s13 }
  0x42   : > { %257 = vadd.xlane.f32.xlu0 %v256_v2  ;;  %v259_v3 = vmul.f32 %v256_v2, %v256_v2  ;;  %s544_s30 = sshra.s32 %s307_s13, 4  ;;  %s550_s8 = scalar_lea.hbm %s802_s4, 16  ;;  %s545_s30 = int_to_ptr.hbm [resolvable:$true] %s544_s30 }
  0x43   : > { %s546_s22 = scalar_lea.hbm %s545_s30, 8  ;;  %p551_p10 = scmp.lt.s32.totalorder %s545_s30, %s802_s4 }
  0x44   : > { %p547_p6 = scmp.ne.s32.totalorder %s545_s30, %s546_s22  ;;  %p552_p2 = scmp.lt.s32.totalorder %s550_s8, %s546_s22 }
  0x46   : > { %p548_p13 = pnand %p547_p6, %p677_p11  ;;  %p553_p9 = por %p552_p2, %p551_p10 }
  0x48   : > { %p549_p3 = pneg %p548_p13 }
  0x4a   : > { %260 = vadd.xlane.f32.xlu0 %v259_v3  ;;  %p554_p0 = pnand %p553_p9, %p549_p3 }
  0xb5   : > { %v258_v4 = vpop.xlane.xlu0 %257 }
  0xb6   : > { %v262_v5 = vmul.f32 0.0078125, %v258_v4 }
  0xb8   : > { %v264_v7 = vmul.f32 %v262_v5, %v262_v5  ;;  %v280_v18 = vsub.f32 %v256_v2, %v262_v5 }
  0xbd   : > { %v261_v6 = vpop.xlane.xlu0 %260 }
  0xbe   : > { %v263_v8 = vmul.f32 0.0078125, %v261_v6 }
  0xc0   : > { %v265_v9 = vsub.f32 %v263_v8, %v264_v7 }
  0xc2   : > { %v266_v10 = vmax.f32 %v265_v9, 0.0 }
  0xc4   : > { %v267_v11 = vadd.f32 1e-05, %v266_v10 }
  0xc6   : > { %468 = vrsqrt.f32 %v267_v11  ;;  %vm274_vm1 = vweird.f32 %v267_v11 }
  0xcc   : > { %v469_v12 = vpop.eup %468 }
  0xcd   : > { %v269_v13 = vmul.f32 %v469_v12, %v267_v11  ;;  %vm275_vm0 = vweird.f32 %v469_v12 }
  0xce   : > { %vm276_vm2 = vmor %vm274_vm1, %vm275_vm0 }
  0xcf   : > { %v270_v14 = vmul.f32 %v469_v12, %v269_v13 }
  0xd1   : > { %v271_v15 = vmul.f32 0.5, %v270_v14 }
  0xd3   : > { %v272_v16 = vsub.f32 1.5, %v271_v15 }
  0xd5   : > { %v273_v17 = vmul.f32 %v469_v12, %v272_v16 }
  0xd7   : > { %v277_v20 = vsel %vm276_vm2, %v469_v12, %v273_v17 }
  0xd8   : > { %v281_v21 = vmul.f32 %v280_v18, %v277_v20 }
  0xda   : > { %v285_v23 = vmul.f32 %v466_v19, %v281_v21 }
  0xdc   : > { %v289_v24 = vadd.f32 %v467_v22, %v285_v23 }
  0xde   : > { %290 = vst [vmem:[%s253_s19] sm:$0xff] %v289_v24 }
  0xdf   : > { %557 = shalt.err (!%p554_p0)
}
  0xe0   : > { %419 = dma.vmem_to_hbm [thread:$0]  (%p677_p11), %s305_s11, 128, %s307_s13, %s292_s10  }
  0xe1 PF: > { %s318_s29 = sand.u32 1, %s588_s15   ;;  %p811_p1 = scmp.ge.s32.totalorder %s600_s18, 2 }
  0xe2   : > { %s319_s14 = scalar_lea.sflag [#allocation4], %s318_s29 }
  0xe3   : > { %p429_p4 = pnand %p811_p1, %p681_p12 }
  0xe5   : > { %p430_p7 = pneg %p429_p4 }
  0xe7   : > { %583 = dma.done.wait (%p430_p7), %s319_s14, 128  }
  0xe8   : > { %585 = vsyncadd (%p430_p7), %s319_s14, 4294967168  ;;  %p20_p5 = scmp.ge.s32.totalorder %s652_s21, 4   ;;  %s812_s15 = smov %s592_s16 }
  0xe9   : > { %s813_s16 = smov %s596_s17  ;;  %s814_s17 = smov %s664_s24 }
  0xea   : > { %s815_s18 = smov %s652_s21  ;;  %22 = sbr.rel (!%p20_p5) target bundleno = 9 (0x9), region = 94 }
  0xef   :  { %325 = vsyncpa [#allocation3], 1 }
  0xf0   :  { %327 = vsyncpa [#allocation3 + $0x1], 1 }
  0xf1   :  { %328 = vsyncpa [#allocation6], 1 }
  0xf2   :  { %330 = vsyncpa [#allocation6 + $0x1], 1 }
  0xf3   :  { %331 = vsyncpa [#allocation4], 1 }
  0xf4   :  { %333 = vsyncpa [#allocation4 + $0x1], 1 }

</bundles_post_ra>
